<compile_context>
chip_gen: v7x
topology: tpu7x:2x2x1
jax: 0.10.0
libtpu: 0.0.40
codegen_flags: <defaults>
</compile_context>

<pallas_src>
import functools

import jax
import jax.numpy as jnp
from jax.experimental import pallas as pl
from jax.experimental.pallas import tpu as pltpu


def _round_up(x, m):
    return ((x + m - 1) // m) * m


def _mf_fused_kernel(uid_ref, pid_ref, nid_ref,      # SMEM scalar-prefetch index vectors (B_pad,)
                     uemb_ref, iemb_ref,              # embedding tables, raw HBM refs (pl.ANY)
                     scores_ref, cat_ref, u_out_ref,  # outputs: (2, bt), (bt, 2, D), (bt, D)
                     p_buf, n_buf, sem):              # scratch: (bt, D) x2, DMA sems (3,)
    bt = u_out_ref.shape[0]
    base = pl.program_id(0) * bt

    # Issue all per-row gathers for this tile (3 streams, one shared DMA
    # semaphore per stream).  User rows land directly in the `u` output block.
    @pl.loop(0, bt)
    def _issue(r):
        pltpu.make_async_copy(uemb_ref.at[uid_ref[base + r]], u_out_ref.at[r], sem.at[0]).start()
        pltpu.make_async_copy(iemb_ref.at[pid_ref[base + r]], p_buf.at[r], sem.at[1]).start()
        pltpu.make_async_copy(iemb_ref.at[nid_ref[base + r]], n_buf.at[r], sem.at[2]).start()

    # Drain: every copy on a given stream has identical size, so each wait
    # retires exactly one completed row copy (src row index is irrelevant).
    @pl.loop(0, bt)
    def _drain(r):
        pltpu.make_async_copy(uemb_ref.at[0], u_out_ref.at[r], sem.at[0]).wait()
        pltpu.make_async_copy(iemb_ref.at[0], p_buf.at[r], sem.at[1]).wait()
        pltpu.make_async_copy(iemb_ref.at[0], n_buf.at[r], sem.at[2]).wait()

    u = u_out_ref[...]          # (bt, D)
    p = p_buf[...]              # (bt, D)
    n = n_buf[...]              # (bt, D)

    # Dot-product scores: one lane-dense (2, bt) store (pos row 0, neg row 1).
    pos_s = jnp.sum(u * p, axis=1)
    neg_s = jnp.sum(u * n, axis=1)
    scores_ref[...] = jnp.stack([pos_s, neg_s], axis=0)

    # torch.cat((pos_emb, neg_emb), dim=-1): lane-aligned full-width stores into
    # a (bt, 2, D) block; row-major reshape to (bt, 2D) outside is free.
    cat_ref[:, 0, :] = p
    cat_ref[:, 1, :] = n


def _choose_batch_tile(B, D, *, max_bt=1024, vmem_budget_bytes=24 << 20):
    """Pick the batch tile from a per-step VMEM budget (works on v5e/v6e/v7x)."""
    d_lanes = _round_up(max(D, 1), 128)
    # per-row VMEM bytes: 2 scratch rows + 2x double-buffered u-out row
    #                     + 2x double-buffered cat row (middle dim padded to 8 sublanes)
    per_row = 4 * d_lanes * (2 + 2 + 16)
    bt = min(max_bt, max(vmem_budget_bytes // per_row, 128))
    bt = (bt // 128) * 128                      # lane-dense score stores
    if B >= 256:                                # guarantee >= 2 grid steps (v7x megacore)
        bt = min(bt, _round_up((B + 1) // 2, 128))
    if _round_up(B, 8) <= bt:                   # single tile covers the whole batch
        bt = _round_up(B, 8)
    return max(bt, 8)


@jax.jit
def mf_self_forward(user_idx, pos_idx, neg_idx, user_emb, item_emb):
    """Fused gather + BPR-style scoring.

    Returns (pos_score (B,1), neg_score (B,1), cat(pos,neg) (B,2D), u (B,D)).
    """
    B = user_idx.shape[0]
    D = user_emb.shape[1]
    dtype = user_emb.dtype

    bt = _choose_batch_tile(B, D)
    num_tiles = pl.cdiv(B, bt)
    B_pad = num_tiles * bt

    # Only the tiny int32 index vectors are padded (with valid index 0); the
    # padded rows gather row 0 and are sliced off below.
    # NOTE: the index vectors live in SMEM; keep B_pad <= ~64K per call.
    def _prep(idx):
        idx = idx.astype(jnp.int32)
        if B_pad != B:
            idx = jnp.pad(idx, (0, B_pad - B))
        return idx

    uid, pid, nid = _prep(user_idx), _prep(pos_idx), _prep(neg_idx)

    grid_spec = pltpu.PrefetchScalarGridSpec(
        num_scalar_prefetch=3,
        grid=(num_tiles,),
        in_specs=[
            pl.BlockSpec(memory_space=pl.ANY),   # user_emb stays in HBM
            pl.BlockSpec(memory_space=pl.ANY),   # item_emb stays in HBM
        ],
        out_specs=(
            pl.BlockSpec((2, bt), lambda i, *_: (0, i)),        # scores (lane-dense)
            pl.BlockSpec((bt, 2, D), lambda i, *_: (i, 0, 0)),  # cat(pos, neg)
            pl.BlockSpec((bt, D), lambda i, *_: (i, 0)),        # u passthrough
        ),
        scratch_shapes=[
            pltpu.VMEM((bt, D), dtype),          # pos gather buffer
            pltpu.VMEM((bt, D), dtype),          # neg gather buffer
            pltpu.SemaphoreType.DMA((3,)),       # one DMA sem per gather stream
        ],
    )

    out_shapes = (
        jax.ShapeDtypeStruct((2, B_pad), dtype),
        jax.ShapeDtypeStruct((B_pad, 2, D), dtype),
        jax.ShapeDtypeStruct((B_pad, D), dtype),
    )

    scores, cat3, u = pl.pallas_call(
        _mf_fused_kernel,
        out_shape=out_shapes,
        grid_spec=grid_spec,
        compiler_params=pltpu.CompilerParams(
            dimension_semantics=("parallel",),
            vmem_limit_bytes=48 << 20,
        ),
    )(uid, pid, nid, user_emb, item_emb)

    pos_score = scores[0, :B].reshape(B, 1)
    neg_score = scores[1, :B].reshape(B, 1)
    cat = cat3[:B].reshape(B, 2 * D)    # row-major reshape: free
    u = u[:B]
    return pos_score, neg_score, cat, u


class MFSelfPallas:
    """Deterministically-initialized MF model; forward hot path runs in Pallas."""

    def __init__(self, num_users, num_items, embedding_dim, key):
        ku, ki = jax.random.split(key)
        # nn.Embedding default init is N(0, 1); match it deterministically.
        self.user_emb = jax.random.normal(ku, (num_users, embedding_dim), dtype=jnp.float32)
        self.item_emb = jax.random.normal(ki, (num_items, embedding_dim), dtype=jnp.float32)

    def forward(self, mini_batch):
        return mf_self_forward(
            mini_batch["user"], mini_batch["pos_item"], mini_batch["neg_item"],
            self.user_emb, self.item_emb)


def _reference_forward(model, mini_batch):
    u = jnp.take(model.user_emb, mini_batch["user"], axis=0)
    pos = jnp.take(model.item_emb, mini_batch["pos_item"], axis=0)
    neg = jnp.take(model.item_emb, mini_batch["neg_item"], axis=0)
    pos_score = jnp.sum(u * pos, axis=1, keepdims=True)
    neg_score = jnp.sum(u * neg, axis=1, keepdims=True)
    return pos_score, neg_score, jnp.concatenate([pos, neg], axis=-1), u


if __name__ == "__main__":
    key = jax.random.PRNGKey(0)
    k_model, k_u, k_p, k_n, k_u2, k_p2, k_n2 = jax.random.split(key, 7)

    num_users, num_items, embedding_dim = 10, 12, 32
    model = MFSelfPallas(num_users, num_items, embedding_dim, k_model)

    # Case 1: small batch (single tile).
    batch = 16
    mini_batch = {
        "user": jax.random.randint(k_u, (batch,), 0, num_users, dtype=jnp.int32),
        "pos_item": jax.random.randint(k_p, (batch,), 0, num_items, dtype=jnp.int32),
        "neg_item": jax.random.randint(k_n, (batch,), 0, num_items, dtype=jnp.int32),
    }
    outs = jax.block_until_ready(model.forward(mini_batch))
    refs = _reference_forward(model, mini_batch)
    for o, r in zip(outs, refs):
        assert o.shape == r.shape and o.dtype == r.dtype
        assert jnp.allclose(o, r, atol=1e-5, rtol=1e-5)

    # Case 2: ragged batch that needs padding and a 2-step parallel grid.
    batch2 = 300
    mini_batch2 = {
        "user": jax.random.randint(k_u2, (batch2,), 0, num_users, dtype=jnp.int32),
        "pos_item": jax.random.randint(k_p2, (batch2,), 0, num_items, dtype=jnp.int32),
        "neg_item": jax.random.randint(k_n2, (batch2,), 0, num_items, dtype=jnp.int32),
    }
    outs2 = jax.block_until_ready(model.forward(mini_batch2))
    refs2 = _reference_forward(model, mini_batch2)
    for o, r in zip(outs2, refs2):
        assert o.shape == r.shape and o.dtype == r.dtype
        assert jnp.allclose(o, r, atol=1e-5, rtol=1e-5)

    print("KERNEL_OK")
</pallas_src>

<mosaic_0001>
module attributes {stable_mosaic.version = 11 : i64} {
  func.func @_mf_fused_kernel(%arg0: i32, %arg1: memref<16xi32, #tpu.memory_space<smem>>, %arg2: memref<16xi32, #tpu.memory_space<smem>>, %arg3: memref<16xi32, #tpu.memory_space<smem>>, %arg4: memref<10x32xf32, #tpu.memory_space<any>>, %arg5: memref<12x32xf32, #tpu.memory_space<any>>, %arg6: memref<2x16xf32, #tpu.memory_space<vmem>>, %arg7: memref<16x2x32xf32, #tpu.memory_space<vmem>>, %arg8: memref<16x32xf32, #tpu.memory_space<vmem>>, %arg9: memref<16x32xf32, #tpu.memory_space<vmem>>, %arg10: memref<16x32xf32, #tpu.memory_space<vmem>>, %arg11: memref<3x!tpu.dma_semaphore, #tpu.memory_space<semaphore_mem>>) attributes {dimension_semantics = [#tpu.dimension_semantics<parallel>], iteration_bounds = array<i64: 1>, scalar_prefetch = 3 : i64, scratch_operands = 3 : i64, tpu.core_type = #tpu.core_type<tc>, window_params = [{}, {}, {transform_indices = @transform_2, window_bounds = array<i64: 2, 16>}, {transform_indices = @transform_3, window_bounds = array<i64: 16, 2, 32>}, {transform_indices = @transform_4, window_bounds = array<i64: 16, 32>}]} {
    %c16_i32 = arith.constant 16 : i32
    %0 = arith.muli %arg0, %c16_i32 : i32
    %c0_i32 = arith.constant 0 : i32
    %c16_i32_0 = arith.constant 16 : i32
    %1 = arith.addi %c0_i32, %c16_i32_0 : i32
    %c1_i32 = arith.constant 1 : i32
    scf.for %arg12 = %c0_i32 to %1 step %c1_i32  : i32 {
      %c1_i32_19 = arith.constant 1 : i32
      %20 = arith.muli %arg12, %c1_i32_19 : i32
      %c0_i32_20 = arith.constant 0 : i32
      %21 = arith.addi %c0_i32_20, %20 : i32
      %22 = arith.addi %0, %21 : i32
      %23 = arith.index_cast %22 : i32 to index
      %24 = memref.load %arg1[%23] : memref<16xi32, #tpu.memory_space<smem>>
      %c0_i32_21 = arith.constant 0 : i32
      %c0_i32_22 = arith.constant 0 : i32
      %25 = tpu.memref_slice %arg4[%24, %c0_i32_22] : memref<10x32xf32, #tpu.memory_space<any>> -> memref<1x32xf32, #tpu.memory_space<any>>
      %26 = tpu.memref_squeeze %25 : memref<1x32xf32, #tpu.memory_space<any>> -> memref<32xf32, #tpu.memory_space<any>>
      %c0_i32_23 = arith.constant 0 : i32
      %27 = tpu.memref_slice %arg8[%21, %c0_i32_23] : memref<16x32xf32, #tpu.memory_space<vmem>> -> memref<1x32xf32, #tpu.memory_space<vmem>>
      %28 = tpu.memref_squeeze %27 : memref<1x32xf32, #tpu.memory_space<vmem>> -> memref<32xf32, #tpu.memory_space<vmem>>
      %29 = tpu.memref_slice %arg11[%c0_i32_21] : memref<3x!tpu.dma_semaphore, #tpu.memory_space<semaphore_mem>> -> memref<1x!tpu.dma_semaphore, #tpu.memory_space<semaphore_mem>>
      %30 = tpu.memref_squeeze %29 : memref<1x!tpu.dma_semaphore, #tpu.memory_space<semaphore_mem>> -> memref<!tpu.dma_semaphore, #tpu.memory_space<semaphore_mem>>
      tpu.enqueue_dma source(%26 : memref<32xf32, #tpu.memory_space<any>>) target(%28 : memref<32xf32, #tpu.memory_space<vmem>>) target_semaphore(%30 : memref<!tpu.dma_semaphore, #tpu.memory_space<semaphore_mem>>)
      %31 = arith.addi %0, %21 : i32
      %32 = arith.index_cast %31 : i32 to index
      %33 = memref.load %arg2[%32] : memref<16xi32, #tpu.memory_space<smem>>
      %c1_i32_24 = arith.constant 1 : i32
      %c0_i32_25 = arith.constant 0 : i32
      %34 = tpu.memref_slice %arg5[%33, %c0_i32_25] : memref<12x32xf32, #tpu.memory_space<any>> -> memref<1x32xf32, #tpu.memory_space<any>>
      %35 = tpu.memref_squeeze %34 : memref<1x32xf32, #tpu.memory_space<any>> -> memref<32xf32, #tpu.memory_space<any>>
      %c0_i32_26 = arith.constant 0 : i32
      %36 = tpu.memref_slice %arg9[%21, %c0_i32_26] : memref<16x32xf32, #tpu.memory_space<vmem>> -> memref<1x32xf32, #tpu.memory_space<vmem>>
      %37 = tpu.memref_squeeze %36 : memref<1x32xf32, #tpu.memory_space<vmem>> -> memref<32xf32, #tpu.memory_space<vmem>>
      %38 = tpu.memref_slice %arg11[%c1_i32_24] : memref<3x!tpu.dma_semaphore, #tpu.memory_space<semaphore_mem>> -> memref<1x!tpu.dma_semaphore, #tpu.memory_space<semaphore_mem>>
      %39 = tpu.memref_squeeze %38 : memref<1x!tpu.dma_semaphore, #tpu.memory_space<semaphore_mem>> -> memref<!tpu.dma_semaphore, #tpu.memory_space<semaphore_mem>>
      tpu.enqueue_dma source(%35 : memref<32xf32, #tpu.memory_space<any>>) target(%37 : memref<32xf32, #tpu.memory_space<vmem>>) target_semaphore(%39 : memref<!tpu.dma_semaphore, #tpu.memory_space<semaphore_mem>>)
      %40 = arith.addi %0, %21 : i32
      %41 = arith.index_cast %40 : i32 to index
      %42 = memref.load %arg3[%41] : memref<16xi32, #tpu.memory_space<smem>>
      %c2_i32 = arith.constant 2 : i32
      %c0_i32_27 = arith.constant 0 : i32
      %43 = tpu.memref_slice %arg5[%42, %c0_i32_27] : memref<12x32xf32, #tpu.memory_space<any>> -> memref<1x32xf32, #tpu.memory_space<any>>
      %44 = tpu.memref_squeeze %43 : memref<1x32xf32, #tpu.memory_space<any>> -> memref<32xf32, #tpu.memory_space<any>>
      %c0_i32_28 = arith.constant 0 : i32
      %45 = tpu.memref_slice %arg10[%21, %c0_i32_28] : memref<16x32xf32, #tpu.memory_space<vmem>> -> memref<1x32xf32, #tpu.memory_space<vmem>>
      %46 = tpu.memref_squeeze %45 : memref<1x32xf32, #tpu.memory_space<vmem>> -> memref<32xf32, #tpu.memory_space<vmem>>
      %47 = tpu.memref_slice %arg11[%c2_i32] : memref<3x!tpu.dma_semaphore, #tpu.memory_space<semaphore_mem>> -> memref<1x!tpu.dma_semaphore, #tpu.memory_space<semaphore_mem>>
      %48 = tpu.memref_squeeze %47 : memref<1x!tpu.dma_semaphore, #tpu.memory_space<semaphore_mem>> -> memref<!tpu.dma_semaphore, #tpu.memory_space<semaphore_mem>>
      tpu.enqueue_dma source(%44 : memref<32xf32, #tpu.memory_space<any>>) target(%46 : memref<32xf32, #tpu.memory_space<vmem>>) target_semaphore(%48 : memref<!tpu.dma_semaphore, #tpu.memory_space<semaphore_mem>>)
    }
    %c16_i32_1 = arith.constant 16 : i32
    %c0_i32_2 = arith.constant 0 : i32
    %c16_i32_3 = arith.constant 16 : i32
    %2 = arith.addi %c0_i32_2, %c16_i32_3 : i32
    %c1_i32_4 = arith.constant 1 : i32
    scf.for %arg12 = %c0_i32_2 to %2 step %c1_i32_4  : i32 {
      %c1_i32_19 = arith.constant 1 : i32
      %20 = arith.muli %arg12, %c1_i32_19 : i32
      %c0_i32_20 = arith.constant 0 : i32
      %21 = arith.addi %c0_i32_20, %20 : i32
      %c0_i32_21 = arith.constant 0 : i32
      %c0_i32_22 = arith.constant 0 : i32
      %c0_i32_23 = arith.constant 0 : i32
      %22 = tpu.memref_slice %arg4[%c0_i32_21, %c0_i32_23] : memref<10x32xf32, #tpu.memory_space<any>> -> memref<1x32xf32, #tpu.memory_space<any>>
      %23 = tpu.memref_squeeze %22 : memref<1x32xf32, #tpu.memory_space<any>> -> memref<32xf32, #tpu.memory_space<any>>
      %c0_i32_24 = arith.constant 0 : i32
      %24 = tpu.memref_slice %arg8[%21, %c0_i32_24] : memref<16x32xf32, #tpu.memory_space<vmem>> -> memref<1x32xf32, #tpu.memory_space<vmem>>
      %25 = tpu.memref_squeeze %24 : memref<1x32xf32, #tpu.memory_space<vmem>> -> memref<32xf32, #tpu.memory_space<vmem>>
      %26 = tpu.memref_slice %arg11[%c0_i32_22] : memref<3x!tpu.dma_semaphore, #tpu.memory_space<semaphore_mem>> -> memref<1x!tpu.dma_semaphore, #tpu.memory_space<semaphore_mem>>
      %27 = tpu.memref_squeeze %26 : memref<1x!tpu.dma_semaphore, #tpu.memory_space<semaphore_mem>> -> memref<!tpu.dma_semaphore, #tpu.memory_space<semaphore_mem>>
      tpu.wait_dma2 semaphore(%27 : memref<!tpu.dma_semaphore, #tpu.memory_space<semaphore_mem>>) src(%23 : memref<32xf32, #tpu.memory_space<any>>) dst(%25 : memref<32xf32, #tpu.memory_space<vmem>>)
      %c0_i32_25 = arith.constant 0 : i32
      %c1_i32_26 = arith.constant 1 : i32
      %c0_i32_27 = arith.constant 0 : i32
      %28 = tpu.memref_slice %arg5[%c0_i32_25, %c0_i32_27] : memref<12x32xf32, #tpu.memory_space<any>> -> memref<1x32xf32, #tpu.memory_space<any>>
      %29 = tpu.memref_squeeze %28 : memref<1x32xf32, #tpu.memory_space<any>> -> memref<32xf32, #tpu.memory_space<any>>
      %c0_i32_28 = arith.constant 0 : i32
      %30 = tpu.memref_slice %arg9[%21, %c0_i32_28] : memref<16x32xf32, #tpu.memory_space<vmem>> -> memref<1x32xf32, #tpu.memory_space<vmem>>
      %31 = tpu.memref_squeeze %30 : memref<1x32xf32, #tpu.memory_space<vmem>> -> memref<32xf32, #tpu.memory_space<vmem>>
      %32 = tpu.memref_slice %arg11[%c1_i32_26] : memref<3x!tpu.dma_semaphore, #tpu.memory_space<semaphore_mem>> -> memref<1x!tpu.dma_semaphore, #tpu.memory_space<semaphore_mem>>
      %33 = tpu.memref_squeeze %32 : memref<1x!tpu.dma_semaphore, #tpu.memory_space<semaphore_mem>> -> memref<!tpu.dma_semaphore, #tpu.memory_space<semaphore_mem>>
      tpu.wait_dma2 semaphore(%33 : memref<!tpu.dma_semaphore, #tpu.memory_space<semaphore_mem>>) src(%29 : memref<32xf32, #tpu.memory_space<any>>) dst(%31 : memref<32xf32, #tpu.memory_space<vmem>>)
      %c0_i32_29 = arith.constant 0 : i32
      %c2_i32 = arith.constant 2 : i32
      %c0_i32_30 = arith.constant 0 : i32
      %34 = tpu.memref_slice %arg5[%c0_i32_29, %c0_i32_30] : memref<12x32xf32, #tpu.memory_space<any>> -> memref<1x32xf32, #tpu.memory_space<any>>
      %35 = tpu.memref_squeeze %34 : memref<1x32xf32, #tpu.memory_space<any>> -> memref<32xf32, #tpu.memory_space<any>>
      %c0_i32_31 = arith.constant 0 : i32
      %36 = tpu.memref_slice %arg10[%21, %c0_i32_31] : memref<16x32xf32, #tpu.memory_space<vmem>> -> memref<1x32xf32, #tpu.memory_space<vmem>>
      %37 = tpu.memref_squeeze %36 : memref<1x32xf32, #tpu.memory_space<vmem>> -> memref<32xf32, #tpu.memory_space<vmem>>
      %38 = tpu.memref_slice %arg11[%c2_i32] : memref<3x!tpu.dma_semaphore, #tpu.memory_space<semaphore_mem>> -> memref<1x!tpu.dma_semaphore, #tpu.memory_space<semaphore_mem>>
      %39 = tpu.memref_squeeze %38 : memref<1x!tpu.dma_semaphore, #tpu.memory_space<semaphore_mem>> -> memref<!tpu.dma_semaphore, #tpu.memory_space<semaphore_mem>>
      tpu.wait_dma2 semaphore(%39 : memref<!tpu.dma_semaphore, #tpu.memory_space<semaphore_mem>>) src(%35 : memref<32xf32, #tpu.memory_space<any>>) dst(%37 : memref<32xf32, #tpu.memory_space<vmem>>)
    }
    %c16_i32_5 = arith.constant 16 : i32
    %c0 = arith.constant 0 : index
    %c0_6 = arith.constant 0 : index
    %3 = vector.load %arg8[%c0, %c0_6] : memref<16x32xf32, #tpu.memory_space<vmem>>, vector<16x32xf32>
    %c0_7 = arith.constant 0 : index
    %c0_8 = arith.constant 0 : index
    %4 = vector.load %arg9[%c0_7, %c0_8] : memref<16x32xf32, #tpu.memory_space<vmem>>, vector<16x32xf32>
    %c0_9 = arith.constant 0 : index
    %c0_10 = arith.constant 0 : index
    %5 = vector.load %arg10[%c0_9, %c0_10] : memref<16x32xf32, #tpu.memory_space<vmem>>, vector<16x32xf32>
    %6 = arith.mulf %3, %4 : vector<16x32xf32>
    %cst = arith.constant dense<0.000000e+00> : vector<16xf32>
    %7 = vector.multi_reduction <add>, %6, %cst [1] : vector<16x32xf32> to vector<16xf32>
    %8 = arith.mulf %3, %5 : vector<16x32xf32>
    %cst_11 = arith.constant dense<0.000000e+00> : vector<16xf32>
    %9 = vector.multi_reduction <add>, %8, %cst_11 [1] : vector<16x32xf32> to vector<16xf32>
    %10 = vector.shape_cast %7 : vector<16xf32> to vector<1x16xf32>
    %11 = vector.shape_cast %9 : vector<16xf32> to vector<1x16xf32>
    %12 = tpu.concatenate %10, %11 in 0 : vector<1x16xf32>, vector<1x16xf32> -> vector<2x16xf32>
    %c0_12 = arith.constant 0 : index
    %c0_13 = arith.constant 0 : index
    %13 = vector.load %arg6[%c0_12, %c0_13] : memref<2x16xf32, #tpu.memory_space<vmem>>, vector<2x16xf32>
    tpu.vector_store %arg6[%c0_12, %c0_13], %12 {strides = array<i32>} : memref<2x16xf32, #tpu.memory_space<vmem>>, vector<2x16xf32>,
    %c0_14 = arith.constant 0 : index
    %c0_15 = arith.constant 0 : index
    %c0_16 = arith.constant 0 : index
    %14 = vector.load %arg7[%c0_14, %c0_15, %c0_16] : memref<16x2x32xf32, #tpu.memory_space<vmem>>, vector<16x1x32xf32>
    %15 = vector.shape_cast %14 : vector<16x1x32xf32> to vector<16x32xf32>
    %16 = vector.shape_cast %4 : vector<16x32xf32> to vector<16x1x32xf32>
    tpu.vector_store %arg7[%c0_14, %c0_15, %c0_16], %16 {strides = array<i32>} : memref<16x2x32xf32, #tpu.memory_space<vmem>>, vector<16x1x32xf32>,
    %c0_17 = arith.constant 0 : index
    %c1 = arith.constant 1 : index
    %c0_18 = arith.constant 0 : index
    %17 = vector.load %arg7[%c0_17, %c1, %c0_18] : memref<16x2x32xf32, #tpu.memory_space<vmem>>, vector<16x1x32xf32>
    %18 = vector.shape_cast %17 : vector<16x1x32xf32> to vector<16x32xf32>
    %19 = vector.shape_cast %5 : vector<16x32xf32> to vector<16x1x32xf32>
    tpu.vector_store %arg7[%c0_17, %c1, %c0_18], %19 {strides = array<i32>} : memref<16x2x32xf32, #tpu.memory_space<vmem>>, vector<16x1x32xf32>,
    return
  }
  func.func @transform_2(%arg0: i32, %arg1: memref<16xi32, #tpu.memory_space<smem>>, %arg2: memref<16xi32, #tpu.memory_space<smem>>, %arg3: memref<16xi32, #tpu.memory_space<smem>>) -> (i32, i32) {
    %c0_i32 = arith.constant 0 : i32
    %c0_i32_0 = arith.constant 0 : i32
    return %c0_i32, %arg0 : i32, i32
  }
  func.func @transform_3(%arg0: i32, %arg1: memref<16xi32, #tpu.memory_space<smem>>, %arg2: memref<16xi32, #tpu.memory_space<smem>>, %arg3: memref<16xi32, #tpu.memory_space<smem>>) -> (i32, i32, i32) {
    %c0_i32 = arith.constant 0 : i32
    %c0_i32_0 = arith.constant 0 : i32
    %c0_i32_1 = arith.constant 0 : i32
    return %arg0, %c0_i32, %c0_i32_0 : i32, i32, i32
  }
  func.func @transform_4(%arg0: i32, %arg1: memref<16xi32, #tpu.memory_space<smem>>, %arg2: memref<16xi32, #tpu.memory_space<smem>>, %arg3: memref<16xi32, #tpu.memory_space<smem>>) -> (i32, i32) {
    %c0_i32 = arith.constant 0 : i32
    %c0_i32_0 = arith.constant 0 : i32
    return %arg0, %c0_i32 : i32, i32
  }
}

</mosaic_0001>

<bundles_post_ra>
// kernel: mf_self_forward.1
= control target key start
LH: loop header
LB: loop body
LE: loop exit
PB: predicated region body
PF: predicated region fallthrough
CT: control target
= control target key end

     0   :  { %s994_s0 = inlined_call_operand.hbm [shape: s32[16], index: 0, kind: input, shape index: {}]   ;;  %s995_s3 = inlined_call_operand.hbm [shape: f32[10,32], index: 3, kind: input, shape index: {}]   ;;  %s996_s4 = inlined_call_operand.hbm [shape: f32[12,32], index: 4, kind: input, shape index: {}]   ;;  %s997_s5 = inlined_call_operand.vmem [shape: f32[2,16], index: 5, kind: output, shape index: {0}]   ;;  %s998_s6 = inlined_call_operand.vmem [shape: f32[16,2,32], index: 6, kind: output, shape index: {1}]   ;;  %s999_s7 = inlined_call_operand.hbm [shape: f32[16,32], index: 7, kind: output, shape index: {2}]   ;;  %s1000_s1 = inlined_call_operand.vmem [shape: s32[16], index: 1, kind: input, shape index: {}]   ;;  %s1001_s2 = inlined_call_operand.vmem [shape: s32[16], index: 2, kind: input, shape index: {}]  }
   0x1   :  { %s511_s26 = scalar_lea.hbm %s994_s0, 16 }
   0x2   :  { %p512_p0 = scmp.ne.s32.totalorder %s994_s0, %s511_s26  ;;  %p515_p1 = scmp.lt.u32.totalorder %s511_s26, %s994_s0 }
   0x4   :  { %p517_p2 = pnand %p515_p1, %p512_p0 }
   0x6   :  { %520 = shalt.err (!%p517_p2)  }
   0x7   :  { %s665_s8 = smov [#allocation6]   ;;  %s15_s13 = sshll.u32 %s1000_s1, 4  ;;  %s16_s13 = int_to_ptr.vmem [resolvable:$true] %s15_s13 }
   0x8   :  { %14 = dma.hbm_to_smem %s994_s0, 16, %s665_s8, [#allocation5] }
   0x9   :  { %s19_s16 = sshll.u32 %s1001_s2, 4  ;;  %s521_s17 = scalar_lea.vmem %s16_s13, 16  ;;  %s20_s16 = int_to_ptr.vmem [resolvable:$true] %s19_s16 }
   0xa   :  { %p522_p3 = scmp.ne.s32.totalorder %s16_s13, %s521_s17  ;;  %p526_p4 = scmp.lt.s32.totalorder %s16_s13, %s16_s13 }
   0xb   :  { %p527_p5 = scmp.lt.s32.totalorder %s521_s17, %s521_s17 }
   0xd   :  { %p528_p6 = por %p527_p5, %p526_p4 }
   0xf   :  { %p529_p7 = pnand %p528_p6, %p522_p3 }
  0x11   :  { %532 = shalt.err (!%p529_p7)  }
  0x12   :  { %s666_s18 = smov [#allocation7]   ;;  %s533_s0 = scalar_lea.vmem %s20_s16, 16 }
  0x13   :  { %18 = dma.vmem_to_smem %s16_s13, 16, %s666_s18, [#allocation5] }
  0x14   :  { %p534_p8 = scmp.ne.s32.totalorder %s20_s16, %s533_s0  ;;  %p538_p9 = scmp.lt.s32.totalorder %s20_s16, %s20_s16 }
  0x15   :  { %p539_p10 = scmp.lt.s32.totalorder %s533_s0, %s533_s0 }
  0x17   :  { %p540_p11 = por %p539_p10, %p538_p9 }
  0x19   :  { %p541_p12 = pnand %p540_p11, %p534_p8 }
  0x1b   :  { %544 = shalt.err (!%p541_p12)  }
  0x1c   :  { %s667_s1 = smov [#allocation8]  }
  0x1d   :  { %22 = dma.vmem_to_smem %s20_s16, 16, %s667_s1, [#allocation5] }
  0x1e   :  { %647 = dma.done.wait [#allocation5], 48 }
  0x1f   :  { %648 = vsyncadd [#allocation5], 4294967248 }
  0x20   :  { %24 = sfence }
  0x21   :  { %25 = vsyncpa [#allocation10], 0  ;;  %s732_s2 = smov 0  }
  0x22 LB: > { %s34_s19 = sld [smem:[#allocation6 + %s659_s2]]  ;;  %s37_s20 = scalar_lea.vmem [#allocation9], %s659_s2  ;;  %s659_s2 = sphi %s732_s2, %s32_s2  }
  0x23   : > { %s45_s21 = sshll.u32 %s37_s20, 4  ;;  %s740_s22 = sld [smem:[#allocation7 + %s659_s2]]  ;;  %s746_s21 = int_to_ptr.vmem [resolvable:$true] %s45_s21 }
  0x24   : > { %s52_s23 = scalar_lea.vmem [#allocation2], %s659_s2  ;;  %s744_s25 = sld [smem:[#allocation8 + %s659_s2]] }
  0x25   : > { %s61_s24 = sshll.u32 %s52_s23, 4  ;;  %s68_s26 = scalar_lea.vmem [#allocation3], %s659_s2  ;;  %s748_s24 = int_to_ptr.vmem [resolvable:$true] %s61_s24 }
  0x26   : > { %s77_s27 = sshll.u32 %s68_s26, 4  ;;  %s547_s13 = scalar_lea.hbm %s995_s3, 256  ;;  %s751_s27 = int_to_ptr.vmem [resolvable:$true] %s77_s27 }
  0x28   : > { %s478_s28 = sshll.u32 %s34_s19, 4 }
  0x29   : > { %s36_s8 = scalar_lea.hbm %s995_s3, %s478_s28  ;;  %s479_s9 = sshll.u32 %s740_s22, 4 }
  0x2a   : > { %s545_s10 = scalar_lea.hbm %s36_s8, 16  ;;  %p548_p0 = scmp.lt.u32.totalorder %s36_s8, %s995_s3 }
  0x2b   : > { %p546_p13 = scmp.ne.s32.totalorder %s36_s8, %s545_s10  ;;  %p549_p1 = scmp.lt.u32.totalorder %s547_s13, %s545_s10 }
  0x2c   : > { %p551_p3 = scmp.lt.u32.totalorder %s545_s10, %s36_s8 }
  0x2d   : > { %p550_p2 = por %p549_p1, %p548_p0 }
  0x2f   : > { %p552_p4 = por %p551_p3, %p550_p2 }
  0x31   : > { %p553_p5 = pnand %p552_p4, %p546_p13 }
  0x33   : > { %556 = shalt.err (!%p553_p5)  }
  0x34   : > { %s557_s16 = scalar_lea.vmem %s746_s21, 16  ;;  %s668_s17 = smov [#allocation9]  }
  0x35   : > { %p558_p6 = scmp.ne.s32.totalorder %s746_s21, %s557_s16  ;;  %s559_s18 = sshll.u32 %s668_s17, 4  ;;  %s765_s18 = int_to_ptr.vmem [resolvable:$false] %s559_s18 }
  0x36   : > { %s768_s0 = scalar_lea.vmem %s765_s18, 256  ;;  %p562_p7 = scmp.lt.s32.totalorder %s746_s21, %s765_s18 }
  0x37   : > { %p563_p8 = scmp.lt.s32.totalorder %s768_s0, %s557_s16 }
  0x39   : > { %p564_p9 = por %p563_p8, %p562_p7 }
  0x3b   : > { %p565_p10 = pnand %p564_p9, %p558_p6 }
  0x3d   : > { %568 = shalt.err (!%p565_p10)  }
  0x3e   : > { %48 = dma.hbm_to_vmem [thread:$0]  %s36_s8, 16, %s746_s21, [#allocation4] }
  0x3f   : > { %s51_s20 = scalar_lea.hbm %s996_s4, %s479_s9  ;;  %s480_s22 = sshll.u32 %s744_s25, 4 }
  0x40   : > { %s569_s23 = scalar_lea.hbm %s51_s20, 16  ;;  %s571_s29 = scalar_lea.hbm %s996_s4, 256 }
  0x41   : > { %p570_p11 = scmp.ne.s32.totalorder %s51_s20, %s569_s23  ;;  %p572_p12 = scmp.lt.u32.totalorder %s51_s20, %s996_s4 }
  0x42   : > { %p573_p13 = scmp.lt.u32.totalorder %s571_s29, %s569_s23  ;;  %p575_p1 = scmp.lt.u32.totalorder %s569_s23, %s51_s20 }
  0x44   : > { %p574_p0 = por %p573_p13, %p572_p12 }
  0x46   : > { %p576_p2 = por %p575_p1, %p574_p0 }
  0x48   : > { %p577_p3 = pnand %p576_p2, %p570_p11 }
  0x4a   : > { %580 = shalt.err (!%p577_p3)  }
  0x4b   : > { %s581_s21 = scalar_lea.vmem %s748_s24, 16  ;;  %s669_s25 = smov [#allocation2]  }
  0x4c   : > { %p582_p4 = scmp.ne.s32.totalorder %s748_s24, %s581_s21  ;;  %s583_s8 = sshll.u32 %s669_s25, 4  ;;  %s584_s8 = int_to_ptr.vmem [resolvable:$false] %s583_s8 }
  0x4d   : > { %s585_s9 = scalar_lea.vmem %s584_s8, 256  ;;  %p586_p5 = scmp.lt.s32.totalorder %s748_s24, %s584_s8 }
  0x4e   : > { %p587_p6 = scmp.lt.s32.totalorder %s585_s9, %s581_s21 }
  0x50   : > { %p588_p7 = por %p587_p6, %p586_p5 }
  0x52   : > { %p589_p8 = pnand %p588_p7, %p582_p4 }
  0x54   : > { %592 = shalt.err (!%p589_p8)  }
  0x55   : > { %64 = dma.hbm_to_vmem [thread:$0]  %s51_s20, 16, %s748_s24, [#allocation4 + $0x1] }
  0x56   : > { %s67_s13 = scalar_lea.hbm %s996_s4, %s480_s22 }
  0x57   : > { %s593_s14 = scalar_lea.hbm %s67_s13, 16  ;;  %p596_p10 = scmp.lt.u32.totalorder %s67_s13, %s996_s4 }
  0x58   : > { %p594_p9 = scmp.ne.s32.totalorder %s67_s13, %s593_s14  ;;  %p597_p11 = scmp.lt.u32.totalorder %s571_s29, %s593_s14 }
  0x59   : > { %p599_p13 = scmp.lt.u32.totalorder %s593_s14, %s67_s13 }
  0x5a   : > { %p598_p12 = por %p597_p11, %p596_p10 }
  0x5c   : > { %p600_p0 = por %p599_p13, %p598_p12 }
  0x5e   : > { %p601_p1 = pnand %p600_p0, %p594_p9 }
  0x60   : > { %604 = shalt.err (!%p601_p1)  }
  0x61   : > { %s605_s24 = scalar_lea.vmem %s751_s27, 16  ;;  %s670_s17 = smov [#allocation3]  }
  0x62   : > { %p606_p2 = scmp.ne.s32.totalorder %s751_s27, %s605_s24  ;;  %s607_s1 = sshll.u32 %s670_s17, 4  ;;  %s608_s1 = int_to_ptr.vmem [resolvable:$false] %s607_s1 }
  0x63   : > { %s609_s19 = scalar_lea.vmem %s608_s1, 256  ;;  %p610_p3 = scmp.lt.s32.totalorder %s751_s27, %s608_s1 }
  0x64   : > { %p611_p4 = scmp.lt.s32.totalorder %s609_s19, %s605_s24 }
  0x66   : > { %p612_p5 = por %p611_p4, %p610_p3 }
  0x68   : > { %p613_p6 = pnand %p612_p5, %p606_p2 }
  0x6a   : > { %616 = shalt.err (!%p613_p6)  }
  0x6b   : > { %80 = dma.hbm_to_vmem [thread:$0]  %s67_s13, 16, %s751_s27, [#allocation4 + $0x2] }
  0x6c   : > { %s32_s2 = sadd.s32 1, %s659_s2  }
  0x6d   : > { %p29_p7 = scmp.ge.s32.totalorder %s32_s2, 16  }
  0x6e   :  { %s661_s20 = smov (%p29_p7), 0  }
  0x6f   :  { %31 = sbr.rel (!%p29_p7) target bundleno = 34 (0x22), region = 74 }
  0x76 LB: > { %649 = dma.done.wait [#allocation4], 16  ;;  %s663_s20 = sphi %s661_s20, %s86_s20  }
  0x77   : > { %650 = vsyncadd [#allocation4], 4294967280 }
  0x78   : > { %651 = dma.done.wait [#allocation4 + $0x1], 16 }
  0x79   : > { %652 = vsyncadd [#allocation4 + $0x1], 4294967280 }
  0x7a   : > { %653 = dma.done.wait [#allocation4 + $0x2], 16 }
  0x7b   : > { %654 = vsyncadd [#allocation4 + $0x2], 4294967280  ;;  %s86_s20 = sadd.s32 1, %s663_s20  }
  0x7c   : > { %p83_p8 = scmp.ge.s32.totalorder %s86_s20, 16  }
  0x7d   :  { %v95_v0 = vld [vmem:[#allocation9] sm:$0xff] (%p83_p8)  ;;  %v99_v1 = vld [vmem:[#allocation3] sm:$0xff] (%p83_p8)  ;;  %vm103_vm0 = vcmask (%p83_p8), 261120   ;;  %v120_v2 = vlaneseq (%p83_p8)  ;;  %v671_v4 = vmov (%p83_p8), 1966171168   ;;  %v96_v7 = vld [vmem:[#allocation9 + $0x8] sm:$0xff] (%p83_p8)  ;;  %p618_p9 = scmp.ne.s32.totalorder (%p83_p8), %s765_s18, %s768_s0  ;;  %p622_p10 = scmp.lt.s32.totalorder (%p83_p8), %s765_s18, %s765_s18 }
  0x7e   :  { %85 = sbr.rel (!%p83_p8) target bundleno = 118 (0x76), region = 85  ;;  %v110_v3 = vmul.f32 (%p83_p8), %v99_v1, %v95_v0  ;;  %v154_v5 = vunpack.c.l.s4 (%p83_p8), %v671_v4  ;;  %v97_v6 = vld [vmem:[#allocation2] sm:$0xff] (%p83_p8)  ;;  %v100_v8 = vld [vmem:[#allocation3 + $0x8] sm:$0xff] (%p83_p8)  ;;  %v285_v10 = vcombine.high (%p83_p8), %v99_v1, %v99_v1  ;;  %v98_v13 = vld [vmem:[#allocation2 + $0x8] sm:$0xff] (%p83_p8)  ;;  %vm266_vm1 = vcmask (%p83_p8), 253952   ;;  %p623_p11 = scmp.lt.s32.totalorder (%p83_p8), %s768_s0, %s768_s0 }
  0x7f   :  { %v801_v9 = vshrl.u32 (%p83_p8), %v120_v2, 7  ;;  %v101_v11 = vmul.f32 (%p83_p8), %v97_v6, %v95_v0  ;;  %v111_v12 = vmul.f32 (%p83_p8), %v100_v8, %v96_v7  ;;  %v152_v16 = vcombine.high (%p83_p8), %v97_v6, %v97_v6 }
  0x80   :  { %v112_v14 = vsel (%p83_p8), %vm103_vm0, %v110_v3, 0.0  ;;  %v155_v15 = vunpack.c.0.s8 (%p83_p8), %v154_v5  ;;  %v102_v17 = vmul.f32 (%p83_p8), %v98_v13, %v96_v7  ;;  %v334_v19 = vcombine.high (%p83_p8), %v100_v8, %v100_v8  ;;  %p624_p12 = por (%p83_p8), %p623_p11, %p622_p10 }
  0x81   :  { %113 = vadd.xlane.f32.xlu1 (%p83_p8), %v112_v14  ;;  %v104_v18 = vsel (%p83_p8), %vm103_vm0, %v101_v11, 0.0  ;;  %v201_v20 = vcombine.high (%p83_p8), %v98_v13, %v98_v13  ;;  %v805_v21 = vand.u32 (%p83_p8), 127, %v120_v2  ;;  %v115_v23 = vsel (%p83_p8), %vm103_vm0, %v111_v12, 0.0 }
  0x82   :  { %v808_v22 = vsub.s32 (%p83_p8), %v155_v15, %v801_v9  ;;  %105 = vadd.xlane.f32.xlu0 (%p83_p8), %v104_v18  ;;  %v107_v24 = vsel (%p83_p8), %vm103_vm0, %v102_v17, 0.0  ;;  %p625_p13 = pnand (%p83_p8), %p624_p12, %p618_p9 }
  0x83   :  { %v814_v25 = vsub.s32 (%p83_p8), %v805_v21, %v801_v9  ;;  %v126_v11 = vadd.s32 (%p83_p8), 4294967288, %v805_v21 }
  0x84   :  { %v292_v26 = vrot.slane (%p83_p8), %v99_v1, %v808_v22  ;;  %v299_v27 = vrot.slane (%p83_p8), %v285_v10, %v808_v22  ;;  %v159_v28 = vrot.slane (%p83_p8), %v97_v6, %v808_v22  ;;  %v166_v29 = vrot.slane (%p83_p8), %v152_v16, %v808_v22 }
  0x85   :  { %v341_v30 = vrot.slane %v100_v8, %v808_v22  ;;  %v348_v31 = vrot.slane %v334_v19, %v808_v22  ;;  %116 = vadd.xlane.f32.xlu1 %v115_v23  ;;  %v208_v32 = vrot.slane %v98_v13, %v808_v22  ;;  %v215_v33 = vrot.slane %v201_v20, %v808_v22 }
  0x86   :  { %v300_v34 = vcombine.high %v292_v26, %v292_v26  ;;  %v301_v35 = vcombine.high %v299_v27, %v299_v27  ;;  %v308_v36 = vrot.slane %v292_v26, %v808_v22  ;;  %v315_v37 = vrot.slane %v299_v27, %v808_v22  ;;  %108 = vadd.xlane.f32.xlu0 %v107_v24 }
  0x87   :  { %v167_v38 = vcombine.high %v159_v28, %v159_v28  ;;  %v168_v39 = vcombine.high %v166_v29, %v166_v29  ;;  %v175_v40 = vrot.slane %v159_v28, %v808_v22  ;;  %v182_v41 = vrot.slane %v166_v29, %v808_v22 }
  0x88   :  { %v322_v42 = vrot.slane %v300_v34, %v808_v22  ;;  %v329_v43 = vrot.slane %v301_v35, %v808_v22  ;;  %v330_v44 = vcombine.high %v308_v36, %v308_v36  ;;  %v331_v45 = vcombine.high %v315_v37, %v315_v37  ;;  %399 = vst.msk [vmem:[%s998_s6 + $0x1] sm:$0x1] %vm266_vm1, %v308_v36 }
  0x89   :  { %403 = vst.msk [vmem:[%s998_s6 + $0x9] sm:$0x1] %vm266_vm1, %v315_v37  ;;  %v189_v46 = vrot.slane %v167_v38, %v808_v22  ;;  %v196_v47 = vrot.slane %v168_v39, %v808_v22  ;;  %v197_v48 = vcombine.high %v175_v40, %v175_v40  ;;  %v198_v49 = vcombine.high %v182_v41, %v182_v41 }
  0x8a   :  { %267 = vst.msk [vmem:[%s998_s6] sm:$0x1] %vm266_vm1, %v175_v40  ;;  %271 = vst.msk [vmem:[%s998_s6 + $0x8] sm:$0x1] %vm266_vm1, %v182_v41  ;;  %v332_v50 = vcombine.high %v322_v42, %v322_v42  ;;  %v333_v51 = vcombine.high %v329_v43, %v329_v43  ;;  %v349_v52 = vcombine.high %v341_v30, %v341_v30 }
  0x8b   :  { %400 = vst.msk [vmem:[%s998_s6 + $0x3] sm:$0x1] %vm266_vm1, %v322_v42  ;;  %401 = vst.msk [vmem:[%s998_s6 + $0x5] sm:$0x1] %vm266_vm1, %v330_v44  ;;  %v350_v53 = vcombine.high %v348_v31, %v348_v31  ;;  %v199_v54 = vcombine.high %v189_v46, %v189_v46  ;;  %v200_v55 = vcombine.high %v196_v47, %v196_v47 }
  0x8c   :  { %404 = vst.msk [vmem:[%s998_s6 + $0xb] sm:$0x1] %vm266_vm1, %v329_v43  ;;  %405 = vst.msk [vmem:[%s998_s6 + $0xd] sm:$0x1] %vm266_vm1, %v331_v45  ;;  %v357_v56 = vrot.slane %v341_v30, %v808_v22  ;;  %v364_v57 = vrot.slane %v348_v31, %v808_v22  ;;  %v371_v58 = vrot.slane %v349_v52, %v808_v22 }
  0x8d   :  { %268 = vst.msk [vmem:[%s998_s6 + $0x2] sm:$0x1] %vm266_vm1, %v189_v46  ;;  %269 = vst.msk [vmem:[%s998_s6 + $0x4] sm:$0x1] %vm266_vm1, %v197_v48  ;;  %v378_v59 = vrot.slane %v350_v53, %v808_v22  ;;  %v216_v60 = vcombine.high %v208_v32, %v208_v32  ;;  %v217_v61 = vcombine.high %v215_v33, %v215_v33 }
  0x8e   :  { %272 = vst.msk [vmem:[%s998_s6 + $0xa] sm:$0x1] %vm266_vm1, %v196_v47  ;;  %273 = vst.msk [vmem:[%s998_s6 + $0xc] sm:$0x1] %vm266_vm1, %v198_v49  ;;  %v379_v62 = vcombine.high %v357_v56, %v357_v56  ;;  %v380_v63 = vcombine.high %v364_v57, %v364_v57  ;;  %v224_v0 = vrot.slane %v208_v32, %v808_v22 }
  0x8f   :  { %402 = vst.msk [vmem:[%s998_s6 + $0x7] sm:$0x1] %vm266_vm1, %v332_v50  ;;  %406 = vst.msk [vmem:[%s998_s6 + $0xf] sm:$0x1] %vm266_vm1, %v333_v51  ;;  %v231_v1 = vrot.slane %v215_v33, %v808_v22  ;;  %v381_v2 = vcombine.high %v371_v58, %v371_v58  ;;  %v382_v3 = vcombine.high %v378_v59, %v378_v59 }
  0x90   :  { %270 = vst.msk [vmem:[%s998_s6 + $0x6] sm:$0x1] %vm266_vm1, %v199_v54  ;;  %274 = vst.msk [vmem:[%s998_s6 + $0xe] sm:$0x1] %vm266_vm1, %v200_v55  ;;  %v238_v4 = vrot.slane %v216_v60, %v808_v22  ;;  %v245_v5 = vrot.slane %v217_v61, %v808_v22  ;;  %v246_v6 = vcombine.high %v224_v0, %v224_v0 }
  0x91   :  { %407 = vst.msk [vmem:[%s998_s6 + $0x11] sm:$0x1] %vm266_vm1, %v357_v56  ;;  %411 = vst.msk [vmem:[%s998_s6 + $0x19] sm:$0x1] %vm266_vm1, %v364_v57  ;;  %v247_v7 = vcombine.high %v231_v1, %v231_v1  ;;  %v129_v12 = vsub.s32 %v126_v11, %v801_v9 }
  0x92   :  { %408 = vst.msk [vmem:[%s998_s6 + $0x13] sm:$0x1] %vm266_vm1, %v371_v58  ;;  %412 = vst.msk [vmem:[%s998_s6 + $0x1b] sm:$0x1] %vm266_vm1, %v378_v59  ;;  %v248_v8 = vcombine.high %v238_v4, %v238_v4  ;;  %v249_v10 = vcombine.high %v245_v5, %v245_v5 }
  0x93   :  { %409 = vst.msk [vmem:[%s998_s6 + $0x15] sm:$0x1] %vm266_vm1, %v379_v62  ;;  %413 = vst.msk [vmem:[%s998_s6 + $0x1d] sm:$0x1] %vm266_vm1, %v380_v63 }
  0x94   :  { %275 = vst.msk [vmem:[%s998_s6 + $0x10] sm:$0x1] %vm266_vm1, %v224_v0  ;;  %279 = vst.msk [vmem:[%s998_s6 + $0x18] sm:$0x1] %vm266_vm1, %v231_v1 }
  0x95   :  { %410 = vst.msk [vmem:[%s998_s6 + $0x17] sm:$0x1] %vm266_vm1, %v381_v2  ;;  %414 = vst.msk [vmem:[%s998_s6 + $0x1f] sm:$0x1] %vm266_vm1, %v382_v3 }
  0x96   :  { %276 = vst.msk [vmem:[%s998_s6 + $0x12] sm:$0x1] %vm266_vm1, %v238_v4  ;;  %280 = vst.msk [vmem:[%s998_s6 + $0x1a] sm:$0x1] %vm266_vm1, %v245_v5 }
  0x97   :  { %277 = vst.msk [vmem:[%s998_s6 + $0x14] sm:$0x1] %vm266_vm1, %v246_v6  ;;  %281 = vst.msk [vmem:[%s998_s6 + $0x1c] sm:$0x1] %vm266_vm1, %v247_v7 }
  0x98   :  { %278 = vst.msk [vmem:[%s998_s6 + $0x16] sm:$0x1] %vm266_vm1, %v248_v8  ;;  %282 = vst.msk [vmem:[%s998_s6 + $0x1e] sm:$0x1] %vm266_vm1, %v249_v10 }
  0x99   :  { %628 = shalt.err (!%p625_p13)
}
  0x9a   :  { %s629_s9 = scalar_lea.hbm %s999_s7, 256 }
  0x9b   :  { %p630_p0 = scmp.ne.s32.totalorder %s999_s7, %s629_s9  ;;  %p633_p1 = scmp.lt.u32.totalorder %s629_s9, %s999_s7 }
  0x9d   :  { %p635_p2 = pnand %p633_p1, %p630_p0 }
  0x9f   :  { %638 = shalt.err (!%p635_p2)
}
  0xa0   :  { %s672_s14 = smov 128   ;;  %s673_s0 = smov 8   ;;  %vm131_vm2 = vcmask 130112   ;;  %vm146_vm3 = vcmask 1040384   ;;  %vm148_vm4 = vcmask 123904  }
  0xa1   :  { %430 = dma.vmem_to_hbm [thread:$0]  %s765_s18, 256, %s999_s7, [#allocation10], %s672_s14, %s672_s14, %s673_s0  }
 0x10e   :  { %v114_v9 = vpop.xlane.xlu1 %113 }
 0x10f   :  { %v106_v13 = vpop.xlane.xlu0 %105  ;;  %v139_v15 = vrot.slane %v114_v9, %v814_v25 }
 0x110   :  { %v125_v18 = vrot.slane %v106_v13, %v814_v25 }
 0x112   :  { %v117_v14 = vpop.xlane.xlu1 %116 }
 0x113   :  { %v143_v16 = vrot.slane %v117_v14, %v129_v12  ;;  %v109_v17 = vpop.xlane.xlu0 %108 }
 0x114   :  { %v130_v19 = vrot.slane %v109_v17, %v129_v12 }
 0x115   :  { %v144_v20 = vsel %vm131_vm2, %v143_v16, %v139_v15 }
 0x116   :  { %v132_v21 = vsel %vm131_vm2, %v130_v19, %v125_v18 }
 0x117   :  { %v147_v22 = vsel %vm146_vm3, %v132_v21, %v144_v20 }
 0x118   :  { %149 = vst.msk [vmem:[%s997_s5] sm:$0x3] %vm148_vm4, %v147_v22 }
 0x119   :  { %655 = dma.done.wait [#allocation10], 256  }
 0x11a   :  { %656 = vsyncadd [#allocation10], 4294967040 }
 0x11b   :  { %438 = vsyncpa [#allocation10], 1 }
 0x11c   :  { %439 = vsyncmov [#allocation4] }
 0x11f   :  { %s440_s7 = vpop.sfrf %439 }
 0x120   :  { %p481_p3 = scmp.ne.s32.totalorder %s440_s7, 0 }
 0x122   :  { %444 = shalt.err (%p481_p3)  }
 0x123   :  { %446 = vsyncmov [#allocation4 + $0x1] }
 0x126   :  { %s447_s18 = vpop.sfrf %446 }
 0x127   :  { %p482_p4 = scmp.ne.s32.totalorder %s447_s18, 0 }
 0x129   :  { %451 = shalt.err (%p482_p4)  }
 0x12a   :  { %453 = vsyncmov [#allocation4 + $0x2] }
 0x12d   :  { %s454_s1 = vpop.sfrf %453 }
 0x12e   :  { %p483_p5 = scmp.ne.s32.totalorder %s454_s1, 0 }
 0x130   :  { %458 = shalt.err (%p483_p5)  }

</bundles_post_ra>
